<compile_context>
chip_gen: v5e
topology: v5e:2x2
jax: 0.10.0
libtpu: 0.0.40
codegen_flags: <defaults>
</compile_context>

<pallas_src>
import jax
import jax.numpy as jnp
from jax import lax
from jax.experimental import pallas as pl
from jax.experimental.pallas import tpu as pltpu

# ---- module hyper-parameters: Block(dim=4, dim_out=32, groups=8) ----
CIN = 4              # dim
COUT = 32            # dim_out
GROUPS = 8           # GroupNorm groups
CG = COUT // GROUPS  # channels per group
KH = KW = 3
PAD = 1
EPS = 1e-5           # GroupNorm default eps

B, H, W = 2, 16, 16
PACK = 4                       # pixels packed along the lane axis (4*COUT = 128 lanes)
ROWS = (H * W) // PACK         # 64 packed rows per sample
KFEAT = KH * KW * CIN          # 36 im2col features per pixel
LANES = PACK * COUT            # 128
KPACK = PACK * KFEAT           # 144


def block_kernel(lhs_ref, w_ref, b_ref, gamma_ref, beta_ref, gsel_ref, o_ref):
    # ---- Conv2d(CIN, COUT, 3, padding=1): ONE MXU matmul on the packed layout ----
    # (B*ROWS, 144) x (144, 128) -> (B*ROWS, 128); lane l holds channel l % 32 of
    # pixel 4*row + l // 32.
    y = jnp.dot(lhs_ref[...], w_ref[...],
                preferred_element_type=jnp.float32) + b_ref[...]

    gsel = gsel_ref[...]
    gamma = gamma_ref[...]
    beta = beta_ref[...]

    for s in range(B):                              # static unroll over samples
        ys = y[s * ROWS:(s + 1) * ROWS, :]          # (64, 128) packed tile of sample s
        # ---- GroupNorm(GROUPS, COUT): per-(sample, group) mean / centered var ----
        s1 = jnp.sum(ys, axis=0, keepdims=True)                         # (1, 128)
        gmean = jnp.dot(s1, gsel, preferred_element_type=jnp.float32)   # group mean / lane
        d = ys - gmean
        s2 = jnp.sum(d * d, axis=0, keepdims=True)                      # (1, 128)
        gvar = jnp.dot(s2, gsel, preferred_element_type=jnp.float32)    # group var / lane
        z = d * (lax.rsqrt(gvar + EPS) * gamma) + beta
        # ---- SiLU ----
        z = z * jax.nn.sigmoid(z)
        o_ref[s * ROWS:(s + 1) * ROWS, :] = z       # full-lane unmasked store


def _im2col_packed(x_nhwc):
    """(B,H,W,CIN) -> (B*HW/PACK, PACK*KFEAT) im2col with padding folded in (glue)."""
    xp = jnp.pad(x_nhwc, ((0, 0), (PAD, PAD), (PAD, PAD), (0, 0)))
    patches = jnp.concatenate(
        [xp[:, kh:kh + H, kw:kw + W, :] for kh in range(KH) for kw in range(KW)],
        axis=-1)                                     # (B, H, W, 36)
    # contiguous reshape: row r of sample b holds the 4 patches of pixels 4r..4r+3
    return patches.reshape(B * ROWS, KPACK)          # (128, 144)


@jax.jit
def block_forward(x_nhwc, params):
    w_bd, b2, gamma2, beta2, gsel = params
    lhs = _im2col_packed(x_nhwc)

    out = pl.pallas_call(
        block_kernel,
        out_shape=jax.ShapeDtypeStruct((B * ROWS, LANES), jnp.float32),
        grid_spec=pltpu.PrefetchScalarGridSpec(
            num_scalar_prefetch=0,
            grid=(1,),                               # batch folded into the matmul M dim
            in_specs=[
                pl.BlockSpec((B * ROWS, KPACK), lambda i: (0, 0)),   # packed im2col LHS
                pl.BlockSpec((KPACK, LANES), lambda i: (0, 0)),      # block-diag weight
                pl.BlockSpec((1, LANES), lambda i: (0, 0)),          # conv bias (tiled)
                pl.BlockSpec((1, LANES), lambda i: (0, 0)),          # GN gamma (tiled)
                pl.BlockSpec((1, LANES), lambda i: (0, 0)),          # GN beta  (tiled)
                pl.BlockSpec((LANES, LANES), lambda i: (0, 0)),      # group-avg matrix
            ],
            out_specs=pl.BlockSpec((B * ROWS, LANES), lambda i: (0, 0)),
        ),
    )(lhs, w_bd, b2, gamma2, beta2, gsel)

    # free contiguous reshape: (B*64, 128) rows pack 4 consecutive pixels x 32 channels
    return out.reshape(B, H, W, COUT)


def make_params(w_oihw, bias, gamma, beta):
    """Layout glue: PyTorch OIHW conv weight -> flat block-diagonal packed operands."""
    w_hwio = jnp.transpose(w_oihw, (2, 3, 1, 0))                    # (3,3,CIN,COUT)
    w_flat = w_hwio.reshape(KFEAT, COUT)                            # (36, 32)
    w_bd = jnp.kron(jnp.eye(PACK, dtype=jnp.float32), w_flat)       # (144, 128) block-diag
    b2 = jnp.tile(bias, PACK).reshape(1, LANES)
    gamma2 = jnp.tile(gamma, PACK).reshape(1, LANES)
    beta2 = jnp.tile(beta, PACK).reshape(1, LANES)
    # gsel[i, j] = 1/(CG*H*W) if lanes i and j map to channels of the same group
    ch = jnp.arange(LANES) % COUT
    grp = ch // CG
    gsel = (grp[:, None] == grp[None, :]).astype(jnp.float32) / (CG * H * W)
    return (w_bd, b2, gamma2, beta2, gsel), w_hwio


def ref_forward(x_nhwc, w_hwio, bias, gamma, beta):
    """Pure-JAX reference (Conv2d + GroupNorm + SiLU), same math as the module."""
    dn = ('NHWC', 'HWIO', 'NHWC')
    y = lax.conv_general_dilated(
        x_nhwc, w_hwio, (1, 1), [(PAD, PAD), (PAD, PAD)],
        dimension_numbers=dn, precision=lax.Precision.HIGHEST)
    y = y + bias.reshape(1, 1, 1, COUT)
    Bn, Hn, Wn, Cn = y.shape
    yg = y.reshape(Bn, Hn, Wn, GROUPS, Cn // GROUPS)
    mean = yg.mean(axis=(1, 2, 4), keepdims=True)
    var = jnp.mean((yg - mean) ** 2, axis=(1, 2, 4), keepdims=True)
    yn = (yg - mean) * lax.rsqrt(var + EPS)
    yn = yn.reshape(Bn, Hn, Wn, Cn) * gamma.reshape(1, 1, 1, Cn) + beta.reshape(1, 1, 1, Cn)
    return yn * jax.nn.sigmoid(yn)


if __name__ == "__main__":
    key = jax.random.PRNGKey(0)
    ks = jax.random.split(key, 5)

    # Deterministic synthetic parameters in PyTorch layouts:
    w_oihw = 0.2 * jax.random.normal(ks[0], (COUT, CIN, KH, KW), jnp.float32)  # proj.weight
    bias = 0.1 * jax.random.normal(ks[1], (COUT,), jnp.float32)                # proj.bias
    gamma = 1.0 + 0.1 * jax.random.normal(ks[2], (COUT,), jnp.float32)         # norm.weight
    beta = 0.1 * jax.random.normal(ks[3], (COUT,), jnp.float32)                # norm.bias

    # Activations kept NHWC end-to-end (this is the module's NCHW (2,4,16,16) input,
    # permuted once by the producer; no per-layer transpose round trip).
    x_nhwc = jax.random.normal(ks[4], (B, H, W, CIN), jnp.float32)

    params, w_hwio = make_params(w_oihw, bias, gamma, beta)

    out = jax.block_until_ready(block_forward(x_nhwc, params))
    ref = jax.block_until_ready(ref_forward(x_nhwc, w_hwio, bias, gamma, beta))

    assert out.shape == (B, H, W, COUT)
    assert jnp.allclose(out, ref, rtol=1e-3, atol=1e-3), \
        f"max abs err {jnp.max(jnp.abs(out - ref))}"

    print("KERNEL_OK")
</pallas_src>

<mosaic_0001>
module attributes {stable_mosaic.version = 11 : i64} {
  func.func @block_kernel(%arg0: i32, %arg1: memref<128x144xf32, #tpu.memory_space<vmem>>, %arg2: memref<144x128xf32, #tpu.memory_space<vmem>>, %arg3: memref<1x128xf32, #tpu.memory_space<vmem>>, %arg4: memref<1x128xf32, #tpu.memory_space<vmem>>, %arg5: memref<1x128xf32, #tpu.memory_space<vmem>>, %arg6: memref<128x128xf32, #tpu.memory_space<vmem>>, %arg7: memref<128x128xf32, #tpu.memory_space<vmem>>) attributes {dimension_semantics = [#tpu.dimension_semantics<arbitrary>], iteration_bounds = array<i64: 1>, scalar_prefetch = 0 : i64, scratch_operands = 0 : i64, tpu.core_type = #tpu.core_type<tc>, window_params = [{pipeline_mode = #tpu.pipeline_mode<synchronous>, transform_indices = @transform_0, window_bounds = array<i64: 128, 144>}, {pipeline_mode = #tpu.pipeline_mode<synchronous>, transform_indices = @transform_1, window_bounds = array<i64: 144, 128>}, {pipeline_mode = #tpu.pipeline_mode<synchronous>, transform_indices = @transform_2, window_bounds = array<i64: 1, 128>}, {pipeline_mode = #tpu.pipeline_mode<synchronous>, transform_indices = @transform_3, window_bounds = array<i64: 1, 128>}, {pipeline_mode = #tpu.pipeline_mode<synchronous>, transform_indices = @transform_4, window_bounds = array<i64: 1, 128>}, {pipeline_mode = #tpu.pipeline_mode<synchronous>, transform_indices = @transform_5, window_bounds = array<i64: 128, 128>}, {pipeline_mode = #tpu.pipeline_mode<synchronous>, transform_indices = @transform_6, window_bounds = array<i64: 128, 128>}]} {
    %c0 = arith.constant 0 : index
    %c0_0 = arith.constant 0 : index
    %0 = vector.load %arg1[%c0, %c0_0] : memref<128x144xf32, #tpu.memory_space<vmem>>, vector<128x144xf32>
    %c0_1 = arith.constant 0 : index
    %c0_2 = arith.constant 0 : index
    %1 = vector.load %arg2[%c0_1, %c0_2] : memref<144x128xf32, #tpu.memory_space<vmem>>, vector<144x128xf32>
    %cst = arith.constant dense<0.000000e+00> : vector<128x128xf32>
    %2 = tpu.matmul %0, %1, %cst {dimension_numbers = #tpu.dot_dimension_numbers<[1], [0], [0], [1], [0, 0, 1, 1], [], []>} : vector<128x144xf32>, vector<144x128xf32>, vector<128x128xf32> -> vector<128x128xf32>
    %c0_3 = arith.constant 0 : index
    %c0_4 = arith.constant 0 : index
    %3 = vector.load %arg3[%c0_3, %c0_4] : memref<1x128xf32, #tpu.memory_space<vmem>>, vector<1x128xf32>
    %4 = vector.broadcast %3 : vector<1x128xf32> to vector<128x128xf32>
    %5 = arith.addf %2, %4 : vector<128x128xf32>
    %c0_5 = arith.constant 0 : index
    %c0_6 = arith.constant 0 : index
    %6 = vector.load %arg6[%c0_5, %c0_6] : memref<128x128xf32, #tpu.memory_space<vmem>>, vector<128x128xf32>
    %c0_7 = arith.constant 0 : index
    %c0_8 = arith.constant 0 : index
    %7 = vector.load %arg4[%c0_7, %c0_8] : memref<1x128xf32, #tpu.memory_space<vmem>>, vector<1x128xf32>
    %c0_9 = arith.constant 0 : index
    %c0_10 = arith.constant 0 : index
    %8 = vector.load %arg5[%c0_9, %c0_10] : memref<1x128xf32, #tpu.memory_space<vmem>>, vector<1x128xf32>
    %9 = vector.extract_strided_slice %5 {offsets = [0, 0], sizes = [64, 128], strides = [1, 1]} : vector<128x128xf32> to vector<64x128xf32>
    %cst_11 = arith.constant dense<0.000000e+00> : vector<128xf32>
    %10 = vector.multi_reduction <add>, %9, %cst_11 [0] : vector<64x128xf32> to vector<128xf32>
    %11 = vector.shape_cast %10 : vector<128xf32> to vector<1x128xf32>
    %cst_12 = arith.constant dense<0.000000e+00> : vector<1x128xf32>
    %12 = tpu.matmul %11, %6, %cst_12 {dimension_numbers = #tpu.dot_dimension_numbers<[1], [0], [0], [1], [0, 0, 1, 1], [], []>} : vector<1x128xf32>, vector<128x128xf32>, vector<1x128xf32> -> vector<1x128xf32>
    %13 = vector.broadcast %12 : vector<1x128xf32> to vector<64x128xf32>
    %14 = arith.subf %9, %13 : vector<64x128xf32>
    %15 = arith.mulf %14, %14 : vector<64x128xf32>
    %cst_13 = arith.constant dense<0.000000e+00> : vector<128xf32>
    %16 = vector.multi_reduction <add>, %15, %cst_13 [0] : vector<64x128xf32> to vector<128xf32>
    %17 = vector.shape_cast %16 : vector<128xf32> to vector<1x128xf32>
    %cst_14 = arith.constant dense<0.000000e+00> : vector<1x128xf32>
    %18 = tpu.matmul %17, %6, %cst_14 {dimension_numbers = #tpu.dot_dimension_numbers<[1], [0], [0], [1], [0, 0, 1, 1], [], []>} : vector<1x128xf32>, vector<128x128xf32>, vector<1x128xf32> -> vector<1x128xf32>
    %cst_15 = arith.constant 9.99999974E-6 : f32
    %19 = vector.broadcast %cst_15 : f32 to vector<1x128xf32>
    %20 = arith.addf %18, %19 : vector<1x128xf32>
    %21 = math.rsqrt %20 : vector<1x128xf32>
    %22 = arith.mulf %21, %7 : vector<1x128xf32>
    %23 = vector.broadcast %22 : vector<1x128xf32> to vector<64x128xf32>
    %24 = arith.mulf %14, %23 : vector<64x128xf32>
    %25 = vector.broadcast %8 : vector<1x128xf32> to vector<64x128xf32>
    %26 = arith.addf %24, %25 : vector<64x128xf32>
    %27 = arith.negf %26 : vector<64x128xf32>
    %28 = math.exp %27 : vector<64x128xf32>
    %cst_16 = arith.constant 1.000000e+00 : f32
    %29 = vector.broadcast %cst_16 : f32 to vector<64x128xf32>
    %30 = arith.addf %29, %28 : vector<64x128xf32>
    %31 = arith.divf %29, %30 : vector<64x128xf32>
    %32 = arith.mulf %26, %31 : vector<64x128xf32>
    %c0_17 = arith.constant 0 : index
    %c0_18 = arith.constant 0 : index
    %33 = vector.load %arg7[%c0_17, %c0_18] : memref<128x128xf32, #tpu.memory_space<vmem>>, vector<64x128xf32>
    tpu.vector_store %arg7[%c0_17, %c0_18], %32 {strides = array<i32>} : memref<128x128xf32, #tpu.memory_space<vmem>>, vector<64x128xf32>,
    %34 = vector.extract_strided_slice %5 {offsets = [64, 0], sizes = [64, 128], strides = [1, 1]} : vector<128x128xf32> to vector<64x128xf32>
    %cst_19 = arith.constant dense<0.000000e+00> : vector<128xf32>
    %35 = vector.multi_reduction <add>, %34, %cst_19 [0] : vector<64x128xf32> to vector<128xf32>
    %36 = vector.shape_cast %35 : vector<128xf32> to vector<1x128xf32>
    %cst_20 = arith.constant dense<0.000000e+00> : vector<1x128xf32>
    %37 = tpu.matmul %36, %6, %cst_20 {dimension_numbers = #tpu.dot_dimension_numbers<[1], [0], [0], [1], [0, 0, 1, 1], [], []>} : vector<1x128xf32>, vector<128x128xf32>, vector<1x128xf32> -> vector<1x128xf32>
    %38 = vector.broadcast %37 : vector<1x128xf32> to vector<64x128xf32>
    %39 = arith.subf %34, %38 : vector<64x128xf32>
    %40 = arith.mulf %39, %39 : vector<64x128xf32>
    %cst_21 = arith.constant dense<0.000000e+00> : vector<128xf32>
    %41 = vector.multi_reduction <add>, %40, %cst_21 [0] : vector<64x128xf32> to vector<128xf32>
    %42 = vector.shape_cast %41 : vector<128xf32> to vector<1x128xf32>
    %cst_22 = arith.constant dense<0.000000e+00> : vector<1x128xf32>
    %43 = tpu.matmul %42, %6, %cst_22 {dimension_numbers = #tpu.dot_dimension_numbers<[1], [0], [0], [1], [0, 0, 1, 1], [], []>} : vector<1x128xf32>, vector<128x128xf32>, vector<1x128xf32> -> vector<1x128xf32>
    %cst_23 = arith.constant 9.99999974E-6 : f32
    %44 = vector.broadcast %cst_23 : f32 to vector<1x128xf32>
    %45 = arith.addf %43, %44 : vector<1x128xf32>
    %46 = math.rsqrt %45 : vector<1x128xf32>
    %47 = arith.mulf %46, %7 : vector<1x128xf32>
    %48 = vector.broadcast %47 : vector<1x128xf32> to vector<64x128xf32>
    %49 = arith.mulf %39, %48 : vector<64x128xf32>
    %50 = vector.broadcast %8 : vector<1x128xf32> to vector<64x128xf32>
    %51 = arith.addf %49, %50 : vector<64x128xf32>
    %52 = arith.negf %51 : vector<64x128xf32>
    %53 = math.exp %52 : vector<64x128xf32>
    %cst_24 = arith.constant 1.000000e+00 : f32
    %54 = vector.broadcast %cst_24 : f32 to vector<64x128xf32>
    %55 = arith.addf %54, %53 : vector<64x128xf32>
    %56 = arith.divf %54, %55 : vector<64x128xf32>
    %57 = arith.mulf %51, %56 : vector<64x128xf32>
    %c64 = arith.constant 64 : index
    %c0_25 = arith.constant 0 : index
    %58 = vector.load %arg7[%c64, %c0_25] : memref<128x128xf32, #tpu.memory_space<vmem>>, vector<64x128xf32>
    tpu.vector_store %arg7[%c64, %c0_25], %57 {strides = array<i32>} : memref<128x128xf32, #tpu.memory_space<vmem>>, vector<64x128xf32>,
    return
  }
  func.func @transform_0(%arg0: i32) -> (i32, i32) {
    %c0_i32 = arith.constant 0 : i32
    %c0_i32_0 = arith.constant 0 : i32
    %c0_i32_1 = arith.constant 0 : i32
    return %c0_i32, %c0_i32_0 : i32, i32
  }
  func.func @transform_1(%arg0: i32) -> (i32, i32) {
    %c0_i32 = arith.constant 0 : i32
    %c0_i32_0 = arith.constant 0 : i32
    %c0_i32_1 = arith.constant 0 : i32
    return %c0_i32, %c0_i32_0 : i32, i32
  }
  func.func @transform_2(%arg0: i32) -> (i32, i32) {
    %c0_i32 = arith.constant 0 : i32
    %c0_i32_0 = arith.constant 0 : i32
    %c0_i32_1 = arith.constant 0 : i32
    return %c0_i32, %c0_i32_0 : i32, i32
  }
  func.func @transform_3(%arg0: i32) -> (i32, i32) {
    %c0_i32 = arith.constant 0 : i32
    %c0_i32_0 = arith.constant 0 : i32
    %c0_i32_1 = arith.constant 0 : i32
    return %c0_i32, %c0_i32_0 : i32, i32
  }
  func.func @transform_4(%arg0: i32) -> (i32, i32) {
    %c0_i32 = arith.constant 0 : i32
    %c0_i32_0 = arith.constant 0 : i32
    %c0_i32_1 = arith.constant 0 : i32
    return %c0_i32, %c0_i32_0 : i32, i32
  }
  func.func @transform_5(%arg0: i32) -> (i32, i32) {
    %c0_i32 = arith.constant 0 : i32
    %c0_i32_0 = arith.constant 0 : i32
    %c0_i32_1 = arith.constant 0 : i32
    return %c0_i32, %c0_i32_0 : i32, i32
  }
  func.func @transform_6(%arg0: i32) -> (i32, i32) {
    %c0_i32 = arith.constant 0 : i32
    %c0_i32_0 = arith.constant 0 : i32
    %c0_i32_1 = arith.constant 0 : i32
    return %c0_i32, %c0_i32_0 : i32, i32
  }
}

</mosaic_0001>

<bundles_post_ra>
// kernel: block_forward.1
= control target key start
LH: loop header
LB: loop body
LE: loop exit
PB: predicated region body
PF: predicated region fallthrough
CT: control target
= control target key end

     0   :  { %vm77_vm0 = vcmask 130048   ;;  %s1915_s1 = inlined_call_operand.vmem [shape: f32[144,128], index: 1, kind: input, shape index: {}]   ;;  %s1916_s0 = inlined_call_operand.vmem [shape: f32[128,144], index: 0, kind: input, shape index: {}]   ;;  %s1917_s2 = inlined_call_operand.vmem [shape: f32[1,128], index: 2, kind: input, shape index: {}]   ;;  %s1918_s5 = inlined_call_operand.vmem [shape: f32[128,128], index: 5, kind: input, shape index: {}]   ;;  %s1919_s4 = inlined_call_operand.vmem [shape: f32[1,128], index: 4, kind: input, shape index: {}]   ;;  %s1920_s3 = inlined_call_operand.vmem [shape: f32[1,128], index: 3, kind: input, shape index: {}]   ;;  %s1921_s6 = inlined_call_operand.vmem [shape: f32[128,128], index: 6, kind: output, shape index: {}]  }
   0x1   :  { %v70_v0 = vld [vmem:[%s1915_s1 + $0x78] sm:$0xff]  ;;  %v72_v1 = vld [vmem:[%s1915_s1 + $0x88] sm:$0xff]  ;;  %v69_v2 = vld [vmem:[%s1915_s1 + $0x70] sm:$0xff] }
   0x2   :  { %126 = vmatpush.msra.mxu0 %v70_v0  ;;  %205 = vmatpush.msra.mxu1 %v72_v1  ;;  %v71_v3 = vld [vmem:[%s1915_s1 + $0x80] sm:$0xff]  ;;  %v24_v4 = vld [vmem:[%s1916_s0 + $0x8] sm:$0xff]  ;;  %v66_v7 = vld [vmem:[%s1915_s1 + $0x58] sm:$0xff] }
   0x3   :  { %v68_v5 = vld [vmem:[%s1915_s1 + $0x68] sm:$0xff]  ;;  %871 = vmatpush.msra.mxu2 %v70_v0  ;;  %v67_v6 = vld [vmem:[%s1915_s1 + $0x60] sm:$0xff]  ;;  %v65_v8 = vld [vmem:[%s1915_s1 + $0x50] sm:$0xff] }
   0x4   :  { %127 = vmatpush.msra.mxu0 %v69_v2  ;;  %206 = vmatpush.msra.mxu1 %v71_v3  ;;  %v26_v9 = vld [vmem:[%s1916_s0 + $0x18] sm:$0xff]  ;;  %v64_v10 = vld [vmem:[%s1915_s1 + $0x48] sm:$0xff]  ;;  %v63_v11 = vld [vmem:[%s1915_s1 + $0x40] sm:$0xff] }
   0x5   :  { %839 = vmatmul.msk.f32.vlgmr.msra.gmra.mxu1 %vm77_vm0, %v24_v4  ;;  %872 = vmatpush.msra.mxu2 %v69_v2  ;;  %v62_v12 = vld [vmem:[%s1915_s1 + $0x38] sm:$0xff]  ;;  %v61_v13 = vld [vmem:[%s1915_s1 + $0x30] sm:$0xff]  ;;  %v28_v14 = vld [vmem:[%s1916_s0 + $0x28] sm:$0xff] }
   0x6   :  { %128 = vmatpush.msra.mxu0 %v68_v5  ;;  %v60_v15 = vld [vmem:[%s1915_s1 + $0x28] sm:$0xff]  ;;  %v59_v16 = vld [vmem:[%s1915_s1 + $0x20] sm:$0xff]  ;;  %v58_v17 = vld [vmem:[%s1915_s1 + $0x18] sm:$0xff] }
   0x7   :  { %873 = vmatpush.msra.mxu2 %v68_v5  ;;  %v57_v18 = vld [vmem:[%s1915_s1 + $0x10] sm:$0xff]  ;;  %v30_v19 = vld [vmem:[%s1916_s0 + $0x38] sm:$0xff]  ;;  %v56_v20 = vld [vmem:[%s1915_s1 + $0x8] sm:$0xff] }
   0x8   :  { %129 = vmatpush.msra.mxu0 %v67_v6  ;;  %v55_v21 = vld [vmem:[%s1915_s1] sm:$0xff]  ;;  %v32_v23 = vld [vmem:[%s1916_s0 + $0x48] sm:$0xff]  ;;  %v25_v24 = vld [vmem:[%s1916_s0 + $0x10] sm:$0xff] }
   0x9   :  { %874 = vmatpush.msra.mxu2 %v67_v6  ;;  %v23_v22 = vld [vmem:[%s1916_s0] sm:$0xff]  ;;  %v34_v26 = vld [vmem:[%s1916_s0 + $0x58] sm:$0xff]  ;;  %v45_v28 = vld [vmem:[%s1916_s0 + $0xb0] sm:$0xff] }
   0xa   :  { %130 = vmatpush.msra.mxu0 %v66_v7  ;;  %v43_v25 = vld [vmem:[%s1916_s0 + $0xa0] sm:$0xff]  ;;  %v36_v29 = vld [vmem:[%s1916_s0 + $0x68] sm:$0xff]  ;;  %v29_v30 = vld [vmem:[%s1916_s0 + $0x30] sm:$0xff] }
   0xb   :  { %875 = vmatpush.msra.mxu2 %v66_v7  ;;  %v27_v27 = vld [vmem:[%s1916_s0 + $0x20] sm:$0xff]  ;;  %v38_v32 = vld [vmem:[%s1916_s0 + $0x78] sm:$0xff]  ;;  %v49_v34 = vld [vmem:[%s1916_s0 + $0xd0] sm:$0xff] }
   0xc   :  { %131 = vmatpush.msra.mxu0 %v65_v8  ;;  %v47_v31 = vld [vmem:[%s1916_s0 + $0xc0] sm:$0xff]  ;;  %v40_v35 = vld [vmem:[%s1916_s0 + $0x88] sm:$0xff]  ;;  %v33_v36 = vld [vmem:[%s1916_s0 + $0x50] sm:$0xff] }
   0xd   :  { %840 = vmatmul.msk.f32.gmra.mxu1 %vm77_vm0, %v26_v9  ;;  %876 = vmatpush.msra.mxu2 %v65_v8  ;;  %v31_v33 = vld [vmem:[%s1916_s0 + $0x40] sm:$0xff]  ;;  %v42_v38 = vld [vmem:[%s1916_s0 + $0x98] sm:$0xff]  ;;  %v53_v40 = vld [vmem:[%s1916_s0 + $0xf0] sm:$0xff] }
   0xe   :  { %132 = vmatpush.msra.mxu0 %v64_v10  ;;  %v51_v37 = vld [vmem:[%s1916_s0 + $0xe0] sm:$0xff]  ;;  %v44_v41 = vld [vmem:[%s1916_s0 + $0xa8] sm:$0xff]  ;;  %v37_v42 = vld [vmem:[%s1916_s0 + $0x70] sm:$0xff] }
   0xf   :  { %877 = vmatpush.msra.mxu2 %v64_v10  ;;  %v35_v39 = vld [vmem:[%s1916_s0 + $0x60] sm:$0xff]  ;;  %v46_v43 = vld [vmem:[%s1916_s0 + $0xb8] sm:$0xff]  ;;  %v48_v45 = vld [vmem:[%s1916_s0 + $0xc8] sm:$0xff] }
  0x10   :  { %133 = vmatpush.msra.mxu0 %v63_v11  ;;  %v39_v44 = vld [vmem:[%s1916_s0 + $0x80] sm:$0xff]  ;;  %v41_v46 = vld [vmem:[%s1916_s0 + $0x90] sm:$0xff]  ;;  %v50_v47 = vld [vmem:[%s1916_s0 + $0xd8] sm:$0xff] }
  0x11   :  { %878 = vmatpush.msra.mxu2 %v63_v11  ;;  %v52_v48 = vld [vmem:[%s1916_s0 + $0xe8] sm:$0xff]  ;;  %v54_v49 = vld [vmem:[%s1916_s0 + $0xf8] sm:$0xff]  ;;  %v270_v59 = vld [vmem:[%s1918_s5 + $0x70] sm:$0xff] }
  0x12   :  { %134 = vmatpush.msra.mxu0 %v62_v12  ;;  %v271_v57 = vld [vmem:[%s1918_s5 + $0x78] sm:$0xff]  ;;  %v1181_v60 = vld [vmem:[%s1918_s5 + $0x68] sm:$0xff]  ;;  %v1188_v62 = vld [vmem:[%s1918_s5 + $0x60] sm:$0xff] }
  0x13   :  { %879 = vmatpush.msra.mxu2 %v62_v12  ;;  %337 = vmatpush.msra.mxu3 %v271_v57  ;;  %v1195_v63 = vld [vmem:[%s1918_s5 + $0x58] sm:$0xff]  ;;  %v1204_v1 = vld [vmem:[%s1918_s5 + $0x50] sm:$0xff]  ;;  %v1211_v2 = vld [vmem:[%s1918_s5 + $0x48] sm:$0xff] }
  0x14   :  { %135 = vmatpush.msra.mxu0 %v61_v13  ;;  %v1218_v4 = vld [vmem:[%s1918_s5 + $0x40] sm:$0xff]  ;;  %v1225_v5 = vld [vmem:[%s1918_s5 + $0x38] sm:$0xff]  ;;  %v1234_v7 = vld [vmem:[%s1918_s5 + $0x30] sm:$0xff] }
  0x15   :  { %841 = vmatmul.msk.f32.gmra.mxu1 %vm77_vm0, %v28_v14  ;;  %880 = vmatpush.msra.mxu2 %v61_v13  ;;  %v1241_v8 = vld [vmem:[%s1918_s5 + $0x28] sm:$0xff]  ;;  %v1248_v10 = vld [vmem:[%s1918_s5 + $0x20] sm:$0xff]  ;;  %v1255_v11 = vld [vmem:[%s1918_s5 + $0x18] sm:$0xff] }
  0x16   :  { %136 = vmatpush.msra.mxu0 %v60_v15  ;;  %338 = vmatpush.msra.mxu3 %v270_v59  ;;  %v1266_v14 = vld [vmem:[%s1918_s5 + $0x10] sm:$0xff] }
  0x17   :  { %881 = vmatpush.msra.mxu2 %v60_v15  ;;  %v1273_v15 = vld [vmem:[%s1917_s2] ss:$0 sm:$0xff] }
  0x18   :  { %137 = vmatpush.msra.mxu0 %v59_v16  ;;  %339 = vmatpush.msra.mxu3 %v1181_v60 }
  0x19   :  { %882 = vmatpush.msra.mxu2 %v59_v16  ;;  %v1278_v16 = vld [vmem:[%s1918_s5 + $0x8] sm:$0xff] }
  0x1a   :  { %138 = vmatpush.msra.mxu0 %v58_v17  ;;  %340 = vmatpush.msra.mxu3 %v1188_v62 }
  0x1b   :  { %883 = vmatpush.msra.mxu2 %v58_v17 }
  0x1c   :  { %139 = vmatpush.msra.mxu0 %v57_v18  ;;  %341 = vmatpush.msra.mxu3 %v1195_v63 }
  0x1d   :  { %842 = vmatmul.msk.f32.gmra.mxu1 %vm77_vm0, %v30_v19  ;;  %884 = vmatpush.msra.mxu2 %v57_v18  ;;  %v1286_v19 = vld [vmem:[%s1918_s5] sm:$0xff] }
  0x1e   :  { %140 = vmatpush.msra.mxu0 %v56_v20  ;;  %342 = vmatpush.msra.mxu3 %v1204_v1 }
  0x1f   :  { %885 = vmatpush.msra.mxu2 %v56_v20 }
  0x20   :  { %141 = vmatpush.msra.mxu0 %v55_v21  ;;  %343 = vmatpush.msra.mxu3 %v1211_v2 }
  0x21   :  { %142 = vmatmul.f32.vlgmr.msra.gmra.mxu0 %v23_v22  ;;  %886 = vmatpush.msra.mxu2 %v55_v21 }
  0x22   :  { %172 = vmatmul.f32.vlgmr.msra.gmra.mxu2 %v43_v25  ;;  %344 = vmatpush.msra.mxu3 %v1218_v4 }
  0x23   :  { %287 = vmatpush.msrb.mxu2 %v271_v57 }
  0x24   :  { %345 = vmatpush.msra.mxu3 %v1225_v5 }
  0x25   :  { %843 = vmatmul.msk.f32.gmra.mxu1 %vm77_vm0, %v32_v23  ;;  %288 = vmatpush.msrb.mxu2 %v270_v59 }
  0x26   :  { %346 = vmatpush.msra.mxu3 %v1234_v7 }
  0x27   :  { %289 = vmatpush.msrb.mxu2 %v1181_v60 }
  0x28   :  { %347 = vmatpush.msra.mxu3 %v1241_v8 }
  0x29   :  { %145 = vmatmul.f32.gmra.mxu0 %v25_v24  ;;  %290 = vmatpush.msrb.mxu2 %v1188_v62 }
  0x2a   :  { %175 = vmatmul.f32.gmra.mxu2 %v45_v28  ;;  %348 = vmatpush.msra.mxu3 %v1248_v10 }
  0x2b   :  { %291 = vmatpush.msrb.mxu2 %v1195_v63 }
  0x2c   :  { %349 = vmatpush.msra.mxu3 %v1255_v11 }
  0x2d   :  { %844 = vmatmul.msk.f32.gmra.mxu1 %vm77_vm0, %v34_v26  ;;  %292 = vmatpush.msrb.mxu2 %v1204_v1 }
  0x2e   :  { %350 = vmatpush.msra.mxu3 %v1266_v14 }
  0x2f   :  { %293 = vmatpush.msrb.mxu2 %v1211_v2 }
  0x30   :  { %351 = vmatpush.msra.mxu3 %v1278_v16 }
  0x31   :  { %148 = vmatmul.f32.gmra.mxu0 %v27_v27  ;;  %294 = vmatpush.msrb.mxu2 %v1218_v4 }
  0x32   :  { %178 = vmatmul.f32.gmra.mxu2 %v47_v31  ;;  %352 = vmatpush.msra.mxu3 %v1286_v19 }
  0x33   :  { %295 = vmatpush.msrb.mxu2 %v1225_v5 }
  0x34   :  { %619 = vmatpush.msrb.mxu3 %v271_v57 }
  0x35   :  { %845 = vmatmul.msk.f32.gmra.mxu1 %vm77_vm0, %v36_v29  ;;  %296 = vmatpush.msrb.mxu2 %v1234_v7 }
  0x36   :  { %620 = vmatpush.msrb.mxu3 %v270_v59 }
  0x37   :  { %297 = vmatpush.msrb.mxu2 %v1241_v8 }
  0x38   :  { %621 = vmatpush.msrb.mxu3 %v1181_v60 }
  0x39   :  { %151 = vmatmul.f32.gmra.mxu0 %v29_v30  ;;  %298 = vmatpush.msrb.mxu2 %v1248_v10 }
  0x3a   :  { %181 = vmatmul.f32.gmra.mxu2 %v49_v34  ;;  %622 = vmatpush.msrb.mxu3 %v1188_v62 }
  0x3b   :  { %299 = vmatpush.msrb.mxu2 %v1255_v11 }
  0x3c   :  { %623 = vmatpush.msrb.mxu3 %v1195_v63 }
  0x3d   :  { %846 = vmatmul.msk.f32.gmra.mxu1 %vm77_vm0, %v38_v32  ;;  %300 = vmatpush.msrb.mxu2 %v1266_v14 }
  0x3e   :  { %624 = vmatpush.msrb.mxu3 %v1204_v1 }
  0x3f   :  { %301 = vmatpush.msrb.mxu2 %v1278_v16 }
  0x40   :  { %625 = vmatpush.msrb.mxu3 %v1211_v2 }
  0x41   :  { %154 = vmatmul.f32.gmra.mxu0 %v31_v33  ;;  %302 = vmatpush.msrb.mxu2 %v1286_v19 }
  0x42   :  { %184 = vmatmul.f32.gmra.mxu2 %v51_v37  ;;  %626 = vmatpush.msrb.mxu3 %v1218_v4 }
  0x43   :  { %569 = vmatpush.msra.mxu2 %v271_v57 }
  0x44   :  { %627 = vmatpush.msrb.mxu3 %v1225_v5 }
  0x45   :  { %847 = vmatmul.msk.f32.gmra.mxu1 %vm77_vm0, %v40_v35  ;;  %570 = vmatpush.msra.mxu2 %v270_v59 }
  0x46   :  { %628 = vmatpush.msrb.mxu3 %v1234_v7 }
  0x47   :  { %571 = vmatpush.msra.mxu2 %v1181_v60 }
  0x48   :  { %629 = vmatpush.msrb.mxu3 %v1241_v8 }
  0x49   :  { %157 = vmatmul.f32.gmra.mxu0 %v33_v36  ;;  %572 = vmatpush.msra.mxu2 %v1188_v62 }
  0x4a   :  { %187 = vmatmul.f32.gmra.mxu2 %v53_v40  ;;  %630 = vmatpush.msrb.mxu3 %v1248_v10 }
  0x4b   :  { %573 = vmatpush.msra.mxu2 %v1195_v63 }
  0x4c   :  { %631 = vmatpush.msrb.mxu3 %v1255_v11 }
  0x4d   :  { %848 = vmatmul.msk.f32.gmra.mxu1 %vm77_vm0, %v42_v38  ;;  %574 = vmatpush.msra.mxu2 %v1204_v1 }
  0x4e   :  { %632 = vmatpush.msrb.mxu3 %v1266_v14 }
  0x4f   :  { %575 = vmatpush.msra.mxu2 %v1211_v2 }
  0x50   :  { %633 = vmatpush.msrb.mxu3 %v1278_v16 }
  0x51   :  { %160 = vmatmul.f32.gmra.mxu0 %v35_v39  ;;  %576 = vmatpush.msra.mxu2 %v1218_v4 }
  0x52   :  { %634 = vmatpush.msrb.mxu3 %v1286_v19 }
  0x53   :  { %577 = vmatpush.msra.mxu2 %v1225_v5 }
  0x55   :  { %849 = vmatmul.msk.f32.gmra.mxu1 %vm77_vm0, %v44_v41  ;;  %578 = vmatpush.msra.mxu2 %v1234_v7 }
  0x57   :  { %579 = vmatpush.msra.mxu2 %v1241_v8 }
  0x59   :  { %163 = vmatmul.f32.gmra.mxu0 %v37_v42  ;;  %580 = vmatpush.msra.mxu2 %v1248_v10 }
  0x5b   :  { %581 = vmatpush.msra.mxu2 %v1255_v11 }
  0x5d   :  { %850 = vmatmul.msk.f32.gmra.mxu1 %vm77_vm0, %v46_v43  ;;  %582 = vmatpush.msra.mxu2 %v1266_v14 }
  0x5f   :  { %583 = vmatpush.msra.mxu2 %v1278_v16 }
  0x61   :  { %166 = vmatmul.f32.gmra.mxu0 %v39_v44  ;;  %584 = vmatpush.msra.mxu2 %v1286_v19 }
  0x65   :  { %851 = vmatmul.msk.f32.gmra.mxu1 %vm77_vm0, %v48_v45 }
  0x69   :  { %169 = vmatmul.f32.gmra.mxu0 %v41_v46 }
  0x6d   :  { %852 = vmatmul.msk.f32.gmra.mxu1 %vm77_vm0, %v50_v47 }
  0x75   :  { %853 = vmatmul.msk.f32.gmra.mxu1 %vm77_vm0, %v52_v48 }
  0x7d   :  { %854 = vmatmul.msk.f32.gmra.mxu1 %vm77_vm0, %v54_v49 }
  0x82   :  { %v1158_v50 = vpop.f32.mrf.mxu1 }
  0x8a   :  { %v1160_v51 = vpop.f32.mrf.mxu1 }
  0x92   :  { %v1162_v52 = vpop.f32.mrf.mxu1 }
  0x9a   :  { %v1164_v53 = vpop.f32.mrf.mxu1 }
  0x9e   :  { %v1166_v54 = vpop.f32.mrf.mxu0 }
  0x9f   :  { %v144_v20 = vadd.f32 %v1273_v15, %v1166_v54 }
  0xa1   :  { %v1302_v26 = vadd.f32 %v1158_v50, %v144_v20 }
  0xa2   :  { %v1168_v55 = vpop.f32.mrf.mxu1 }
  0xa5   :  { %v1259_v13 = vpop.f32.mrf.mxu2 }
  0xa6   :  { %v146_v56 = vpop.f32.mrf.mxu0  ;;  %v174_v59 = vadd.f32 %v1273_v15, %v1259_v13 }
  0xa7   :  { %v147_v18 = vadd.f32 %v1273_v15, %v146_v56 }
  0xa9   :  { %v1296_v23 = vadd.f32 %v1160_v51, %v147_v18 }
  0xaa   :  { %v1173_v58 = vpop.f32.mrf.mxu1 }
  0xab   :  { %v274_v30 = vadd.f32 %v1296_v23, %v1302_v26 }
  0xad   :  { %v1299_v25 = vpop.f32.mrf.mxu2 }
  0xae   :  { %v149_v61 = vpop.f32.mrf.mxu0  ;;  %v177_v62 = vadd.f32 %v1273_v15, %v1299_v25 }
  0xaf   :  { %v150_v21 = vadd.f32 %v1273_v15, %v149_v61 }
  0xb1   :  { %v1305_v27 = vadd.f32 %v1162_v52, %v150_v21 }
  0xb2   :  { %v1197_v0 = vpop.f32.mrf.mxu1 }
  0xb3   :  { %v275_v33 = vadd.f32 %v274_v30, %v1305_v27 }
  0xb5   :  { %v179_v42 = vpop.f32.mrf.mxu2 }
  0xb6   :  { %v152_v3 = vpop.f32.mrf.mxu0 }
  0xb7   :  { %v153_v24 = vadd.f32 %v1273_v15, %v152_v3 }
  0xb9   :  { %v1313_v31 = vadd.f32 %v1164_v53, %v153_v24 }
  0xba   :  { %v1227_v6 = vpop.f32.mrf.mxu1 }
  0xbb   :  { %v276_v37 = vadd.f32 %v275_v33, %v1313_v31 }
  0xbd   :  { %v182_v52 = vpop.f32.mrf.mxu2 }
  0xbe   :  { %v155_v9 = vpop.f32.mrf.mxu0  ;;  %v183_v10 = vadd.f32 %v1273_v15, %v182_v52 }
  0xbf   :  { %v156_v28 = vadd.f32 %v1273_v15, %v155_v9 }
  0xc1   :  { %v1320_v34 = vadd.f32 %v1168_v55, %v156_v28 }
  0xc2   :  { %v1257_v12 = vpop.f32.mrf.mxu1 }
  0xc3   :  { %v277_v39 = vadd.f32 %v276_v37, %v1320_v34 }
  0xc5   :  { %v185_v2 = vpop.f32.mrf.mxu2 }
  0xc6   :  { %v158_v17 = vpop.f32.mrf.mxu0  ;;  %v186_v13 = vadd.f32 %v1273_v15, %v185_v2 }
  0xc7   :  { %v159_v32 = vadd.f32 %v1273_v15, %v158_v17 }
  0xc9   :  { %v1327_v38 = vadd.f32 %v1173_v58, %v159_v32 }
  0xca   :  { %v1293_v22 = vpop.f32.mrf.mxu1 }
  0xcb   :  { %v278_v43 = vadd.f32 %v277_v39, %v1327_v38 }
  0xcd   :  { %v188_v14 = vpop.f32.mrf.mxu2 }
  0xce   :  { %v161_v29 = vpop.f32.mrf.mxu0  ;;  %v189_v19 = vadd.f32 %v1273_v15, %v188_v14 }
  0xcf   :  { %v162_v35 = vadd.f32 %v1273_v15, %v161_v29 }
  0xd1   :  { %v1333_v40 = vadd.f32 %v1197_v0, %v162_v35 }
  0xd2   :  { %v238_v36 = vpop.f32.mrf.mxu1 }
  0xd3   :  { %v279_v45 = vadd.f32 %v278_v43, %v1333_v40  ;;  %v1374_v3 = vadd.f32 %v238_v36, %v174_v59 }
  0xd6   :  { %v164_v41 = vpop.f32.mrf.mxu0 }
  0xd7   :  { %v165_v44 = vadd.f32 %v1273_v15, %v164_v41 }
  0xd9   :  { %v1343_v46 = vadd.f32 %v1227_v6, %v165_v44  ;;  %v180_v6 = vadd.f32 %v1273_v15, %v179_v42 }
  0xda   :  { %v241_v47 = vpop.f32.mrf.mxu1 }
  0xdb   :  { %v280_v48 = vadd.f32 %v279_v45, %v1343_v46  ;;  %v1378_v5 = vadd.f32 %v241_v47, %v177_v62 }
  0xdd   :  { %v281_v49 = vrot.slane %v280_v48, 4 }
  0xde   :  { %v167_v50 = vpop.f32.mrf.mxu0 }
  0xdf   :  { %v282_v51 = vadd.f32 %v281_v49, %v280_v48  ;;  %v168_v56 = vadd.f32 %v1273_v15, %v167_v50 }
  0xe1   :  { %v283_v53 = vrot.slane %v282_v51, 2  ;;  %v1369_v63 = vadd.f32 %v1257_v12, %v168_v56 }
  0xe2   :  { %v244_v54 = vpop.f32.mrf.mxu1 }
  0xe3   :  { %v284_v55 = vadd.f32 %v283_v53, %v282_v51  ;;  %v245_v9 = vadd.f32 %v244_v54, %v180_v6 }
  0xe5   :  { %v285_v57 = vrot.slane %v284_v55, 1 }
  0xe6   :  { %v170_v58 = vpop.f32.mrf.mxu0 }
  0xe7   :  { %v171_v60 = vadd.f32 %v1273_v15, %v170_v58  ;;  %v286_v61 = vadd.f32 %v285_v57, %v284_v55 }
  0xe9   :  { %v1372_v0 = vadd.f32 %v1293_v22, %v171_v60  ;;  %303 = vmatmul.f32.vlgmr.msrb.gmra.mxu2 %v286_v61 }
  0xea   :  { %v247_v1 = vpop.f32.mrf.mxu1 }
  0xeb   :  { %v556_v4 = vadd.f32 %v1372_v0, %v1369_v63  ;;  %v248_v16 = vadd.f32 %v247_v1, %v183_v10 }
  0xed   :  { %v557_v7 = vadd.f32 %v556_v4, %v1374_v3 }
  0xef   :  { %v558_v8 = vadd.f32 %v557_v7, %v1378_v5 }
  0xf1   :  { %v559_v12 = vadd.f32 %v558_v8, %v245_v9 }
  0xf2   :  { %v250_v11 = vpop.f32.mrf.mxu1 }
  0xf3   :  { %v560_v17 = vadd.f32 %v559_v12, %v248_v16  ;;  %v251_v18 = vadd.f32 %v250_v11, %v186_v13 }
  0xf5   :  { %v561_v21 = vadd.f32 %v560_v17, %v251_v18 }
  0xfa   :  { %v253_v20 = vpop.f32.mrf.mxu1 }
  0xfb   :  { %v254_v22 = vadd.f32 %v253_v20, %v189_v19 }
  0xfd   :  { %v562_v24 = vadd.f32 %v561_v21, %v254_v22 }
  0xff   :  { %v563_v25 = vrot.slane %v562_v24, 4 }
 0x101   :  { %v564_v28 = vadd.f32 %v563_v25, %v562_v24 }
 0x103   :  { %v565_v29 = vrot.slane %v564_v28, 2 }
 0x105   :  { %v566_v30 = vadd.f32 %v565_v29, %v564_v28 }
 0x107   :  { %v567_v32 = vrot.slane %v566_v30, 1 }
 0x109   :  { %v568_v33 = vadd.f32 %v567_v32, %v566_v30 }
 0x10b   :  { %585 = vmatmul.f32.vlgmr.msra.gmra.mxu2 %v568_v33 }
 0x16c   :  { %v304_v35 = vpop.f32.mrf.mxu2 }
 0x16d   :  { %v307_v36 = vperm.slane %v304_v35, 0 }
 0x16f   :  { %v1387_v37 = vsub.f32 %v1302_v26, %v307_v36  ;;  %v1390_v39 = vsub.f32 %v1296_v23, %v307_v36  ;;  %v1393_v15 = vsub.f32 %v1305_v27, %v307_v36  ;;  %v1396_v41 = vsub.f32 %v1313_v31, %v307_v36 }
 0x170   :  { %v1403_v44 = vsub.f32 %v1320_v34, %v307_v36  ;;  %v1408_v45 = vsub.f32 %v1327_v38, %v307_v36  ;;  %v1413_v47 = vsub.f32 %v1333_v40, %v307_v36  ;;  %v1418_v34 = vsub.f32 %v1343_v46, %v307_v36 }
 0x171   :  { %v316_v42 = vmul.f32 %v1387_v37, %v1387_v37  ;;  %v317_v43 = vmul.f32 %v1390_v39, %v1390_v39  ;;  %v318_v26 = vmul.f32 %v1393_v15, %v1393_v15  ;;  %v319_v27 = vmul.f32 %v1396_v41, %v1396_v41 }
 0x172   :  { %v320_v48 = vmul.f32 %v1403_v44, %v1403_v44  ;;  %v321_v50 = vmul.f32 %v1408_v45, %v1408_v45  ;;  %v322_v38 = vmul.f32 %v1413_v47, %v1413_v47  ;;  %v323_v53 = vmul.f32 %v1418_v34, %v1418_v34 }
 0x173   :  { %v324_v23 = vadd.f32 %v317_v43, %v316_v42 }
 0x175   :  { %v325_v31 = vadd.f32 %v324_v23, %v318_v26  ;;  %v1465_v23 = vld [vmem:[%s1920_s3] sm:$0x1] }
 0x177   :  { %v326_v49 = vadd.f32 %v325_v31, %v319_v27 }
 0x179   :  { %v327_v51 = vadd.f32 %v326_v49, %v320_v48 }
 0x17b   :  { %v328_v52 = vadd.f32 %v327_v51, %v321_v50  ;;  %v1471_v50 = vld [vmem:[%s1919_s4] ss:$0 sm:$0xff] }
 0x17d   :  { %v329_v40 = vadd.f32 %v328_v52, %v322_v38 }
 0x17f   :  { %v330_v54 = vadd.f32 %v329_v40, %v323_v53 }
 0x181   :  { %v331_v55 = vrot.slane %v330_v54, 4 }
 0x183   :  { %v332_v56 = vadd.f32 %v331_v55, %v330_v54 }
 0x185   :  { %v333_v57 = vrot.slane %v332_v56, 2 }
 0x187   :  { %v334_v58 = vadd.f32 %v333_v57, %v332_v56 }
 0x189   :  { %v335_v59 = vrot.slane %v334_v58, 1 }
 0x18b   :  { %v336_v46 = vadd.f32 %v335_v59, %v334_v58 }
 0x18d   :  { %353 = vmatmul.f32.vlgmr.msra.gmra.mxu3 %v336_v46 }
 0x18e   :  { %v586_v60 = vpop.f32.mrf.mxu2 }
 0x18f   :  { %v589_v61 = vperm.slane %v586_v60, 0 }
 0x191   :  { %v1427_v62 = vsub.f32 %v1369_v63, %v589_v61  ;;  %v1430_v1 = vsub.f32 %v1372_v0, %v589_v61  ;;  %v1433_v2 = vsub.f32 %v1374_v3, %v589_v61  ;;  %v1436_v4 = vsub.f32 %v1378_v5, %v589_v61 }
 0x192   :  { %v1442_v8 = vsub.f32 %v245_v9, %v589_v61  ;;  %v1446_v0 = vsub.f32 %v248_v16, %v589_v61  ;;  %v1450_v5 = vsub.f32 %v251_v18, %v589_v61  ;;  %v1454_v14 = vsub.f32 %v254_v22, %v589_v61 }
 0x193   :  { %v598_v6 = vmul.f32 %v1427_v62, %v1427_v62  ;;  %v599_v7 = vmul.f32 %v1430_v1, %v1430_v1  ;;  %v600_v63 = vmul.f32 %v1433_v2, %v1433_v2  ;;  %v601_v3 = vmul.f32 %v1436_v4, %v1436_v4 }
 0x194   :  { %v602_v12 = vmul.f32 %v1442_v8, %v1442_v8  ;;  %v603_v9 = vmul.f32 %v1446_v0, %v1446_v0  ;;  %v604_v16 = vmul.f32 %v1450_v5, %v1450_v5  ;;  %v605_v20 = vmul.f32 %v1454_v14, %v1454_v14 }
 0x195   :  { %v606_v10 = vadd.f32 %v599_v7, %v598_v6 }
 0x197   :  { %v607_v11 = vadd.f32 %v606_v10, %v600_v63 }
 0x199   :  { %v608_v13 = vadd.f32 %v607_v11, %v601_v3 }
 0x19b   :  { %v609_v17 = vadd.f32 %v608_v13, %v602_v12 }
 0x19d   :  { %v610_v19 = vadd.f32 %v609_v17, %v603_v9 }
 0x19f   :  { %v611_v21 = vadd.f32 %v610_v19, %v604_v16 }
 0x1a1   :  { %v612_v18 = vadd.f32 %v611_v21, %v605_v20 }
 0x1a3   :  { %v613_v24 = vrot.slane %v612_v18, 4 }
 0x1a5   :  { %v614_v25 = vadd.f32 %v613_v24, %v612_v18 }
 0x1a7   :  { %v615_v28 = vrot.slane %v614_v25, 2 }
 0x1a9   :  { %v616_v29 = vadd.f32 %v615_v28, %v614_v25 }
 0x1ab   :  { %v617_v30 = vrot.slane %v616_v29, 1 }
 0x1ad   :  { %v618_v22 = vadd.f32 %v617_v30, %v616_v29 }
 0x1af   :  { %635 = vmatmul.f32.vlgmr.msrb.gmra.mxu3 %v618_v22 }
 0x210   :  { %v354_v32 = vpop.f32.mrf.mxu3 }
 0x211   :  { %v355_v33 = vadd.f32 1e-05, %v354_v32 }
 0x213   :  { %889 = vrsqrt.f32 %v355_v33  ;;  %vm363_vm2 = vweird.f32 %v355_v33 }
 0x219   :  { %v890_v35 = vpop.eup %889 }
 0x21a   :  { %v358_v36 = vmul.f32 %v890_v35, %v355_v33  ;;  %vm364_vm1 = vweird.f32 %v890_v35 }
 0x21b   :  { %vm365_vm3 = vmor %vm363_vm2, %vm364_vm1 }
 0x21c   :  { %v359_v42 = vmul.f32 %v890_v35, %v358_v36 }
 0x21e   :  { %v360_v43 = vmul.f32 0.5, %v359_v42 }
 0x220   :  { %v361_v26 = vsub.f32 1.5, %v360_v43 }
 0x222   :  { %v362_v27 = vmul.f32 %v890_v35, %v361_v26 }
 0x224   :  { %v366_v31 = vsel %vm365_vm3, %v890_v35, %v362_v27 }
 0x225   :  { %v367_v48 = vmul.f32 %v366_v31, %v1465_v23 }
 0x227   :  { %v368_v49 = vperm.slane %v367_v48, 0 }
 0x229   :  { %v369_v51 = vmul.f32 %v368_v49, %v1387_v37  ;;  %v370_v38 = vmul.f32 %v368_v49, %v1390_v39  ;;  %v371_v52 = vmul.f32 %v368_v49, %v1393_v15  ;;  %v372_v53 = vmul.f32 %v368_v49, %v1396_v41 }
 0x22a   :  { %v373_v40 = vmul.f32 %v368_v49, %v1403_v44  ;;  %v374_v54 = vmul.f32 %v368_v49, %v1408_v45  ;;  %v375_v55 = vmul.f32 %v368_v49, %v1413_v47  ;;  %v376_v56 = vmul.f32 %v368_v49, %v1418_v34 }
 0x22b   :  { %v1482_v57 = vadd.f32 %v1471_v50, %v369_v51  ;;  %v1485_v58 = vadd.f32 %v1471_v50, %v370_v38  ;;  %v1488_v37 = vadd.f32 %v1471_v50, %v371_v52  ;;  %v1491_v39 = vadd.f32 %v1471_v50, %v372_v53 }
 0x22c   :  { %v1494_v15 = vadd.f32 %v1471_v50, %v373_v40  ;;  %v1497_v41 = vadd.f32 %v1471_v50, %v374_v54  ;;  %v1503_v34 = vadd.f32 %v1471_v50, %v375_v55  ;;  %v1507_v46 = vadd.f32 %v1471_v50, %v376_v56 }
 0x22d   :  { %v855_v44 = vmul.f32 -1.442695, %v1482_v57  ;;  %v856_v45 = vmul.f32 -1.442695, %v1485_v58  ;;  %v857_v47 = vmul.f32 -1.442695, %v1488_v37 }
 0x22e   :  { %v858_v59 = vmul.f32 -1.442695, %v1491_v39  ;;  %v859_v60 = vmul.f32 -1.442695, %v1494_v15  ;;  %v860_v61 = vmul.f32 -1.442695, %v1497_v41 }
 0x22f   :  { %891 = vpow2.f32 %v855_v44  ;;  %v861_v6 = vmul.f32 -1.442695, %v1503_v34  ;;  %v862_v7 = vmul.f32 -1.442695, %v1507_v46 }
 0x230   :  { %893 = vpow2.f32 %v856_v45 }
 0x231   :  { %895 = vpow2.f32 %v857_v47 }
 0x232   :  { %897 = vpow2.f32 %v858_v59  ;;  %v636_v10 = vpop.f32.mrf.mxu3 }
 0x233   :  { %899 = vpow2.f32 %v859_v60  ;;  %v1520_v16 = vadd.f32 1e-05, %v636_v10 }
 0x234   :  { %901 = vpow2.f32 %v860_v61 }
 0x235   :  { %v892_v63 = vpop.eup %891  ;;  %903 = vpow2.f32 %v861_v6 }
 0x236   :  { %v894_v3 = vpop.eup %893  ;;  %v1513_v11 = vadd.f32 1.0, %v892_v63  ;;  %905 = vpow2.f32 %v862_v7 }
 0x237   :  { %v896_v12 = vpop.eup %895  ;;  %v1515_v13 = vadd.f32 1.0, %v894_v3 }
 0x238   :  { %v898_v9 = vpop.eup %897  ;;  %v1517_v17 = vadd.f32 1.0, %v896_v12  ;;  %907 = vrcp.f32 %v1513_v11  ;;  %v431_v24 = vand.u32 2147483648, %v1513_v11  ;;  %vm425_vm4 = vweird.f32 %v1513_v11 }
 0x239   :  { %v900_v19 = vpop.eup %899  ;;  %v1522_v20 = vadd.f32 1.0, %v898_v9  ;;  %909 = vrcp.f32 %v1515_v13  ;;  %v446_v28 = vand.u32 2147483648, %v1515_v13  ;;  %v429_v32 = vand.u32 2147483647, %v1513_v11 }
 0x23a   :  { %v902_v21 = vpop.eup %901  ;;  %v1525_v18 = vadd.f32 1.0, %v900_v19  ;;  %911 = vrcp.f32 %v1517_v17  ;;  %v432_v36 = vor.u32 1.1754944e-38, %v431_v24  ;;  %vm440_vm5 = vweird.f32 %v1515_v13 }
 0x23b   :  { %v904_v25 = vpop.eup %903  ;;  %913 = vrsqrt.f32 %v1520_v16  ;;  %v1531_v30 = vadd.f32 1.0, %v902_v21  ;;  %v444_v42 = vand.u32 2147483647, %v1515_v13  ;;  %v461_v43 = vand.u32 2147483648, %v1517_v17 }
 0x23c   :  { %v906_v29 = vpop.eup %905  ;;  %915 = vrcp.f32 %v1522_v20  ;;  %v1546_v26 = vadd.f32 1.0, %v904_v25  ;;  %v447_v31 = vor.u32 1.1754944e-38, %v446_v28  ;;  %vm455_vm6 = vweird.f32 %v1517_v17 }
 0x23d   :  { %917 = vrcp.f32 %v1525_v18  ;;  %v459_v48 = vand.u32 2147483647, %v1517_v17  ;;  %v1554_v51 = vadd.f32 1.0, %v906_v29  ;;  %v474_v52 = vand.u32 2147483647, %v1522_v20 }
 0x23e   :  { %v1534_v22 = vpop.eup %907  ;;  %919 = vrcp.f32 %v1531_v30  ;;  %vm1561_vm8 = vcmp.eq.f32.partialorder %v429_v32, 8.507059e+37  ;;  %vm470_vm9 = vweird.f32 %v1522_v20  ;;  %v476_v56 = vand.u32 2147483648, %v1522_v20 }
 0x23f   :  { %v1539_v33 = vpop.eup %909  ;;  %v421_v35 = vmul.f32 %v1534_v22, %v1513_v11  ;;  %vm426_vm7 = vweird.f32 %v1534_v22  ;;  %vm1570_vm10 = vcmp.eq.f32.partialorder %v444_v42, 8.507059e+37  ;;  %v462_v59 = vor.u32 1.1754944e-38, %v461_v43 }
 0x240   :  { %v436_v27 = vmul.f32 %v1539_v33, %v1515_v13  ;;  %v1552_v49 = vpop.eup %911  ;;  %vm485_vm11 = vweird.f32 %v1525_v18  ;;  %v489_v60 = vand.u32 2147483647, %v1525_v18  ;;  %vm441_vm12 = vweird.f32 %v1539_v33  ;;  %vm1597_vm0 = vmor %vm425_vm4, %vm426_vm7 }
 0x241   :  { %v422_v38 = vsub.f32 1.0, %v421_v35  ;;  %v1558_v53 = vpop.eup %913  ;;  %v451_v55 = vmul.f32 %v1552_v49, %v1517_v17  ;;  %vm1578_vm13 = vcmp.eq.f32.partialorder %v459_v48, 8.507059e+37  ;;  %vm1584_vm14 = vcmp.eq.f32.partialorder %v474_v52, 8.507059e+37  ;;  %vm1613_vm2 = vmor %vm440_vm5, %vm441_vm12 }
 0x242   :  { %v437_v54 = vsub.f32 1.0, %v436_v27  ;;  %v916_v44 = vpop.eup %915  ;;  %v491_v19 = vand.u32 2147483648, %v1525_v18  ;;  %vm456_vm15 = vweird.f32 %v1552_v49  ;;  %v477_v32 = vor.u32 1.1754944e-38, %v476_v56 }
 0x243   :  { %v423_v45 = vmul.f32 %v1534_v22, %v422_v38  ;;  %v918_v61 = vpop.eup %917  ;;  %v452_v7 = vsub.f32 1.0, %v451_v55  ;;  %v466_v10 = vmul.f32 %v916_v44, %v1522_v20  ;;  %vm1601_vm1 = vcmp.eq.f32.partialorder %v489_v60, 8.507059e+37  ;;  %vm1623_vm4 = vmor %vm455_vm6, %vm456_vm15 }
 0x244   :  { %v438_v6 = vmul.f32 %v1539_v33, %v437_v54  ;;  %v481_v9 = vmul.f32 %v918_v61, %v1525_v18  ;;  %v920_v28 = vpop.eup %919  ;;  %921 = vrcp.f32 %v1546_v26  ;;  %vm471_vm3 = vweird.f32 %v916_v44 }
 0x245   :  { %v424_v3 = vadd.f32 %v1534_v22, %v423_v45  ;;  %v453_v24 = vmul.f32 %v1552_v49, %v452_v7  ;;  %v467_v25 = vsub.f32 1.0, %v466_v10  ;;  %vm486_vm7 = vweird.f32 %v918_v61  ;;  %vm472_vm5 = vmor %vm470_vm9, %vm471_vm3 }
 0x246   :  { %v439_v21 = vadd.f32 %v1539_v33, %v438_v6  ;;  %v482_v35 = vsub.f32 1.0, %v481_v9  ;;  %v496_v13 = vmul.f32 %v920_v28, %v1531_v30  ;;  %v492_v56 = vor.u32 1.1754944e-38, %v491_v19  ;;  %vm487_vm6 = vmor %vm485_vm11, %vm486_vm7 }
 0x247   :  { %v428_v43 = vsel %vm1597_vm0, %v1534_v22, %v424_v3  ;;  %v454_v27 = vadd.f32 %v1552_v49, %v453_v24  ;;  %v468_v48 = vmul.f32 %v916_v44, %v467_v25  ;;  %v504_v45 = vand.u32 2147483647, %v1531_v30 }
 0x248   :  { %v443_v38 = vsel %vm1613_vm2, %v1539_v33, %v439_v21  ;;  %v483_v52 = vmul.f32 %v918_v61, %v482_v35  ;;  %v433_v33 = vsel %vm1561_vm8, %v432_v36, %v428_v43  ;;  %v497_v60 = vsub.f32 1.0, %v496_v13 }
 0x249   :  { %v458_v54 = vsel %vm1623_vm4, %v1552_v49, %v454_v27  ;;  %v469_v55 = vadd.f32 %v916_v44, %v468_v48  ;;  %v506_v6 = vand.u32 2147483648, %v1531_v30  ;;  %v448_v7 = vsel %vm1570_vm10, %v447_v31, %v443_v38 }
 0x24a   :  { %v484_v17 = vadd.f32 %v918_v61, %v483_v52  ;;  %vm501_vm12 = vweird.f32 %v920_v28  ;;  %923 = vrcp.f32 %v1554_v51  ;;  %v922_v49 = vpop.eup %921  ;;  %v463_v36 = vsel %vm1578_vm13, %v462_v59, %v458_v54 }
 0x24b   :  { %v473_v10 = vsel %vm472_vm5, %v916_v44, %v469_v55  ;;  %v498_v3 = vmul.f32 %v920_v28, %v497_v60  ;;  %vm500_vm8 = vweird.f32 %v1531_v30  ;;  %vm1649_vm9 = vcmp.eq.f32.partialorder %v504_v45, 8.507059e+37 }
 0x24c   :  { %v478_v20 = vsel %vm1584_vm14, %v477_v32, %v473_v10  ;;  %v488_v40 = vsel %vm487_vm6, %v918_v61, %v484_v17  ;;  %v511_v31 = vmul.f32 %v922_v49, %v1546_v26  ;;  %v507_v9 = vor.u32 1.1754944e-38, %v506_v6  ;;  %vm502_vm10 = vmor %vm500_vm8, %vm501_vm12 }
 0x24d   :  { %v493_v47 = vsel %vm1601_vm1, %v492_v56, %v488_v40  ;;  %v499_v44 = vadd.f32 %v920_v28, %v498_v3  ;;  %v540_v59 = vmul.f32 %v433_v33, %v1482_v57  ;;  %v541_v63 = vmul.f32 %v448_v7, %v1485_v58 }
 0x24e   :  { %v512_v61 = vsub.f32 1.0, %v511_v31  ;;  %v519_v12 = vand.u32 2147483647, %v1546_v26  ;;  %v542_v19 = vmul.f32 %v463_v36, %v1488_v37  ;;  %v543_v30 = vmul.f32 %v478_v20, %v1491_v39 }
 0x24f   :  { %v503_v21 = vsel %vm502_vm10, %v920_v28, %v499_v44  ;;  %v521_v24 = vand.u32 2147483648, %v1546_v26  ;;  %v544_v25 = vmul.f32 %v493_v47, %v1494_v15  ;;  %548 = vst [vmem:[%s1921_s6] sm:$0xff] %v540_v59  ;;  %v640_v57 = vmul.f32 %v1558_v53, %v1520_v16 }
 0x250   :  { %v924_v58 = vpop.eup %923  ;;  %v508_v29 = vsel %vm1649_vm9, %v507_v9, %v503_v21  ;;  %v513_v32 = vmul.f32 %v922_v49, %v512_v61  ;;  %vm516_vm11 = vweird.f32 %v922_v49  ;;  %549 = vst [vmem:[%s1921_s6 + $0x8] sm:$0xff] %v541_v63  ;;  %vm515_vm13 = vweird.f32 %v1546_v26 }
 0x251   :  { %v526_v37 = vmul.f32 %v924_v58, %v1554_v51  ;;  %v545_v39 = vmul.f32 %v508_v29, %v1497_v41  ;;  %550 = vst [vmem:[%s1921_s6 + $0x10] sm:$0xff] %v542_v19  ;;  %v641_v15 = vmul.f32 %v1558_v53, %v640_v57  ;;  %vm517_vm14 = vmor %vm515_vm13, %vm516_vm11  ;;  %vm520_vm15 = vcmp.eq.f32.partialorder %v519_v12, 8.507059e+37 }
 0x252   :  { %v514_v28 = vadd.f32 %v922_v49, %v513_v32  ;;  %551 = vst [vmem:[%s1921_s6 + $0x18] sm:$0xff] %v543_v30  ;;  %v522_v35 = vor.u32 1.1754944e-38, %v521_v24  ;;  %v534_v11 = vand.u32 2147483647, %v1554_v51  ;;  %v536_v27 = vand.u32 2147483648, %v1554_v51 }
 0x253   :  { %v527_v42 = vsub.f32 1.0, %v526_v37  ;;  %552 = vst [vmem:[%s1921_s6 + $0x20] sm:$0xff] %v544_v25  ;;  %v642_v41 = vmul.f32 0.5, %v641_v15  ;;  %vm646_vm0 = vweird.f32 %v1558_v53  ;;  %vm531_vm1 = vweird.f32 %v924_v58 }
 0x254   :  { %v518_v43 = vsel %vm517_vm14, %v922_v49, %v514_v28  ;;  %553 = vst [vmem:[%s1921_s6 + $0x28] sm:$0xff] %v545_v39  ;;  %vm645_vm2 = vweird.f32 %v1520_v16  ;;  %vm530_vm3 = vweird.f32 %v1554_v51  ;;  %v537_v54 = vor.u32 1.1754944e-38, %v536_v27 }
 0x255   :  { %v523_v26 = vsel %vm520_vm15, %v522_v35, %v518_v43  ;;  %v528_v48 = vmul.f32 %v924_v58, %v527_v42  ;;  %v643_v38 = vsub.f32 1.5, %v642_v41  ;;  %vm647_vm4 = vmor %vm645_vm2, %vm646_vm0  ;;  %vm535_vm5 = vcmp.eq.f32.partialorder %v534_v11, 8.507059e+37 }
 0x256   :  { %v546_v22 = vmul.f32 %v523_v26, %v1503_v34  ;;  %vm532_vm7 = vmor %vm530_vm3, %vm531_vm1 }
 0x257   :  { %v529_v52 = vadd.f32 %v924_v58, %v528_v48  ;;  %v644_v13 = vmul.f32 %v1558_v53, %v643_v38 }
 0x258   :  { %554 = vst [vmem:[%s1921_s6 + $0x30] sm:$0xff] %v546_v22 }
 0x259   :  { %v533_v55 = vsel %vm532_vm7, %v924_v58, %v529_v52  ;;  %v648_v56 = vsel %vm647_vm4, %v1558_v53, %v644_v13 }
 0x25a   :  { %v538_v45 = vsel %vm535_vm5, %v537_v54, %v533_v55  ;;  %v649_v34 = vmul.f32 %v648_v56, %v1465_v23 }
 0x25b   :  { %v547_v16 = vmul.f32 %v538_v45, %v1507_v46 }
 0x25c   :  { %v650_v33 = vperm.slane %v649_v34, 0 }
 0x25d   :  { %555 = vst [vmem:[%s1921_s6 + $0x38] sm:$0xff] %v547_v16 }
 0x25e   :  { %v651_v51 = vmul.f32 %v650_v33, %v1427_v62  ;;  %v652_v17 = vmul.f32 %v650_v33, %v1430_v1  ;;  %v653_v60 = vmul.f32 %v650_v33, %v1433_v2  ;;  %v654_v6 = vmul.f32 %v650_v33, %v1436_v4 }
 0x25f   :  { %v655_v53 = vmul.f32 %v650_v33, %v1442_v8  ;;  %v656_v7 = vmul.f32 %v650_v33, %v1446_v0  ;;  %v657_v23 = vmul.f32 %v650_v33, %v1450_v5  ;;  %v658_v46 = vmul.f32 %v650_v33, %v1454_v14 }
 0x260   :  { %v1713_v10 = vadd.f32 %v1471_v50, %v651_v51  ;;  %v1716_v49 = vadd.f32 %v1471_v50, %v652_v17  ;;  %v1719_v62 = vadd.f32 %v1471_v50, %v653_v60  ;;  %v1722_v1 = vadd.f32 %v1471_v50, %v654_v6 }
 0x261   :  { %v1725_v2 = vadd.f32 %v1471_v50, %v655_v53  ;;  %v1728_v4 = vadd.f32 %v1471_v50, %v656_v7  ;;  %v1734_v14 = vadd.f32 %v1471_v50, %v657_v23  ;;  %v1738_v20 = vadd.f32 %v1471_v50, %v658_v46 }
 0x262   :  { %v863_v8 = vmul.f32 -1.442695, %v1713_v10  ;;  %v864_v0 = vmul.f32 -1.442695, %v1716_v49  ;;  %v865_v5 = vmul.f32 -1.442695, %v1719_v62 }
 0x263   :  { %v866_v36 = vmul.f32 -1.442695, %v1722_v1  ;;  %v867_v40 = vmul.f32 -1.442695, %v1725_v2  ;;  %v868_v3 = vmul.f32 -1.442695, %v1728_v4 }
 0x264   :  { %925 = vpow2.f32 %v863_v8  ;;  %v869_v47 = vmul.f32 -1.442695, %v1734_v14  ;;  %v870_v18 = vmul.f32 -1.442695, %v1738_v20 }
 0x265   :  { %927 = vpow2.f32 %v864_v0 }
 0x266   :  { %929 = vpow2.f32 %v865_v5 }
 0x267   :  { %931 = vpow2.f32 %v866_v36 }
 0x268   :  { %933 = vpow2.f32 %v867_v40 }
 0x269   :  { %935 = vpow2.f32 %v868_v3 }
 0x26a   :  { %v926_v31 = vpop.eup %925  ;;  %937 = vpow2.f32 %v869_v47 }
 0x26b   :  { %v928_v44 = vpop.eup %927  ;;  %v1744_v9 = vadd.f32 1.0, %v926_v31  ;;  %939 = vpow2.f32 %v870_v18 }
 0x26c   :  { %v930_v50 = vpop.eup %929  ;;  %v1746_v59 = vadd.f32 1.0, %v928_v44 }
 0x26d   :  { %v932_v63 = vpop.eup %931  ;;  %v1748_v61 = vadd.f32 1.0, %v930_v50  ;;  %941 = vrcp.f32 %v1744_v9  ;;  %v710_v24 = vand.u32 2147483648, %v1744_v9  ;;  %vm704_vm6 = vweird.f32 %v1744_v9 }
 0x26e   :  { %v934_v12 = vpop.eup %933  ;;  %v1751_v19 = vadd.f32 1.0, %v932_v63  ;;  %943 = vrcp.f32 %v1746_v59  ;;  %v725_v57 = vand.u32 2147483648, %v1746_v59  ;;  %v708_v37 = vand.u32 2147483647, %v1744_v9 }
 0x26f   :  { %v936_v30 = vpop.eup %935  ;;  %v1754_v21 = vadd.f32 1.0, %v934_v12  ;;  %945 = vrcp.f32 %v1748_v61  ;;  %v711_v28 = vor.u32 1.1754944e-38, %v710_v24  ;;  %vm719_vm12 = vweird.f32 %v1746_v59 }
 0x270   :  { %v938_v25 = vpop.eup %937  ;;  %v1759_v29 = vadd.f32 1.0, %v936_v30  ;;  %947 = vrcp.f32 %v1751_v19  ;;  %v723_v35 = vand.u32 2147483647, %v1746_v59  ;;  %v740_v42 = vand.u32 2147483648, %v1748_v61 }
 0x271   :  { %v940_v58 = vpop.eup %939  ;;  %949 = vrcp.f32 %v1754_v21  ;;  %v1774_v41 = vadd.f32 1.0, %v938_v25  ;;  %v726_v11 = vor.u32 1.1754944e-38, %v725_v57  ;;  %vm734_vm8 = vweird.f32 %v1748_v61 }
 0x272   :  { %v738_v27 = vand.u32 2147483647, %v1748_v61  ;;  %v1782_v48 = vadd.f32 1.0, %v940_v58  ;;  %v753_v22 = vand.u32 2147483647, %v1751_v19  ;;  %951 = vrcp.f32 %v1759_v29 }
 0x273   :  { %v1762_v32 = vpop.eup %941  ;;  %vm1787_vm10 = vcmp.eq.f32.partialorder %v708_v37, 8.507059e+37  ;;  %vm749_vm11 = vweird.f32 %v1751_v19  ;;  %v755_v55 = vand.u32 2147483648, %v1751_v19  ;;  %vm1796_vm13 = vcmp.eq.f32.partialorder %v723_v35, 8.507059e+37 }
 0x274   :  { %v1767_v39 = vpop.eup %943  ;;  %v700_v15 = vmul.f32 %v1762_v32, %v1744_v9  ;;  %vm705_vm9 = vweird.f32 %v1762_v32  ;;  %v741_v16 = vor.u32 1.1754944e-38, %v740_v42  ;;  %vm764_vm14 = vweird.f32 %v1754_v21 }
 0x275   :  { %v715_v43 = vmul.f32 %v1767_v39, %v1746_v59  ;;  %v1780_v26 = vpop.eup %945  ;;  %v768_v33 = vand.u32 2147483647, %v1754_v21  ;;  %vm720_vm15 = vweird.f32 %v1767_v39  ;;  %vm1804_vm0 = vcmp.eq.f32.partialorder %v738_v27, 8.507059e+37  ;;  %vm1823_vm3 = vmor %vm704_vm6, %vm705_vm9 }
 0x276   :  { %v701_v38 = vsub.f32 1.0, %v700_v15  ;;  %v730_v54 = vmul.f32 %v1780_v26, %v1748_v61  ;;  %v948_v56 = vpop.eup %947  ;;  %vm1810_vm1 = vcmp.eq.f32.partialorder %v753_v22, 8.507059e+37  ;;  %v770_v8 = vand.u32 2147483648, %v1754_v21  ;;  %vm1839_vm7 = vmor %vm719_vm12, %vm720_vm15 }
 0x277   :  { %v716_v13 = vsub.f32 1.0, %v715_v43  ;;  %v950_v51 = vpop.eup %949  ;;  %v745_v53 = vmul.f32 %v948_v56, %v1751_v19  ;;  %vm735_vm2 = vweird.f32 %v1780_v26  ;;  %v756_v47 = vor.u32 1.1754944e-38, %v755_v55 }
 0x278   :  { %v702_v45 = vmul.f32 %v1762_v32, %v701_v38  ;;  %v731_v60 = vsub.f32 1.0, %v730_v54  ;;  %v760_v46 = vmul.f32 %v950_v51, %v1754_v21  ;;  %v952_v40 = vpop.eup %951  ;;  %vm1827_vm4 = vcmp.eq.f32.partialorder %v768_v33, 8.507059e+37  ;;  %vm1849_vm6 = vmor %vm734_vm8, %vm735_vm2 }
 0x279   :  { %v717_v17 = vmul.f32 %v1767_v39, %v716_v13  ;;  %v746_v36 = vsub.f32 1.0, %v745_v53  ;;  %953 = vrcp.f32 %v1774_v41  ;;  %vm750_vm5 = vweird.f32 %v948_v56 }
 0x27a   :  { %v703_v7 = vadd.f32 %v1762_v32, %v702_v45  ;;  %v732_v5 = vmul.f32 %v1780_v26, %v731_v60  ;;  %v761_v18 = vsub.f32 1.0, %v760_v46  ;;  %vm765_vm9 = vweird.f32 %v950_v51  ;;  %vm751_vm12 = vmor %vm749_vm11, %vm750_vm5 }
 0x27b   :  { %v718_v0 = vadd.f32 %v1767_v39, %v717_v17  ;;  %v747_v63 = vmul.f32 %v948_v56, %v746_v36  ;;  %v775_v59 = vmul.f32 %v952_v40, %v1759_v29  ;;  %v771_v58 = vor.u32 1.1754944e-38, %v770_v8  ;;  %vm766_vm8 = vmor %vm764_vm14, %vm765_vm9 }
 0x27c   :  { %v707_v44 = vsel %vm1823_vm3, %v1762_v32, %v703_v7  ;;  %v733_v50 = vadd.f32 %v1780_v26, %v732_v5  ;;  %v762_v24 = vmul.f32 %v950_v51, %v761_v18  ;;  %v783_v32 = vand.u32 2147483647, %v1759_v29 }
 0x27d   :  { %v722_v12 = vsel %vm1839_vm7, %v1767_v39, %v718_v0  ;;  %v748_v57 = vadd.f32 %v948_v56, %v747_v63  ;;  %v712_v37 = vsel %vm1787_vm10, %v711_v28, %v707_v44  ;;  %v776_v39 = vsub.f32 1.0, %v775_v59 }
 0x27e   :  { %v737_v25 = vsel %vm1849_vm6, %v1780_v26, %v733_v50  ;;  %v763_v61 = vadd.f32 %v950_v51, %v762_v24  ;;  %v785_v15 = vand.u32 2147483648, %v1759_v29  ;;  %v727_v35 = vsel %vm1796_vm13, %v726_v11, %v722_v12 }
 0x27f   :  { %v752_v42 = vsel %vm751_vm12, %v948_v56, %v748_v57  ;;  %vm780_vm15 = vweird.f32 %v952_v40  ;;  %955 = vrcp.f32 %v1782_v48  ;;  %v954_v43 = vpop.eup %953  ;;  %v742_v28 = vsel %vm1804_vm0, %v741_v16, %v737_v25 }
 0x280   :  { %v757_v19 = vsel %vm1810_vm1, %v756_v47, %v752_v42  ;;  %v767_v27 = vsel %vm766_vm8, %v950_v51, %v763_v61  ;;  %v777_v26 = vmul.f32 %v952_v40, %v776_v39  ;;  %v790_v11 = vmul.f32 %v954_v43, %v1774_v41 }
 0x281   :  { %v772_v38 = vsel %vm1827_vm4, %v771_v58, %v767_v27  ;;  %vm779_vm10 = vweird.f32 %v1759_v29  ;;  %v819_v21 = vmul.f32 %v712_v37, %v1713_v10  ;;  %v820_v52 = vmul.f32 %v727_v35, %v1716_v49 }
 0x282   :  { %v778_v22 = vadd.f32 %v952_v40, %v777_v26  ;;  %vm781_vm11 = vmor %vm779_vm10, %vm780_vm15  ;;  %v786_v13 = vor.u32 1.1754944e-38, %v785_v15  ;;  %v791_v54 = vsub.f32 1.0, %v790_v11  ;;  %v821_v55 = vmul.f32 %v742_v28, %v1719_v62 }
 0x283   :  { %v822_v56 = vmul.f32 %v757_v19, %v1722_v1  ;;  %vm784_vm13 = vcmp.eq.f32.partialorder %v783_v32, 8.507059e+37  ;;  %v800_v34 = vand.u32 2147483648, %v1774_v41  ;;  %v823_v16 = vmul.f32 %v772_v38, %v1725_v2  ;;  %827 = vst [vmem:[%s1921_s6 + $0x40] sm:$0xff] %v819_v21 }
 0x284   :  { %v782_v45 = vsel %vm781_vm11, %v952_v40, %v778_v22  ;;  %v792_v49 = vmul.f32 %v954_v43, %v791_v54  ;;  %vm795_vm14 = vweird.f32 %v954_v43  ;;  %v798_v33 = vand.u32 2147483647, %v1774_v41  ;;  %828 = vst [vmem:[%s1921_s6 + $0x48] sm:$0xff] %v820_v52 }
 0x285   :  { %v956_v10 = vpop.eup %955  ;;  %v787_v29 = vsel %vm784_vm13, %v786_v13, %v782_v45  ;;  %829 = vst [vmem:[%s1921_s6 + $0x50] sm:$0xff] %v821_v55  ;;  %vm794_vm0 = vweird.f32 %v1774_v41  ;;  %v801_v51 = vor.u32 1.1754944e-38, %v800_v34  ;;  %v813_v53 = vand.u32 2147483647, %v1782_v48 }
 0x286   :  { %v805_v62 = vmul.f32 %v956_v10, %v1782_v48  ;;  %v824_v1 = vmul.f32 %v787_v29, %v1728_v4  ;;  %v793_v2 = vadd.f32 %v954_v43, %v792_v49  ;;  %830 = vst [vmem:[%s1921_s6 + $0x58] sm:$0xff] %v822_v56  ;;  %vm796_vm1 = vmor %vm794_vm0, %vm795_vm14  ;;  %vm799_vm2 = vcmp.eq.f32.partialorder %v798_v33, 8.507059e+37 }
 0x287   :  { %831 = vst [vmem:[%s1921_s6 + $0x60] sm:$0xff] %v823_v16  ;;  %v815_v4 = vand.u32 2147483648, %v1782_v48  ;;  %vm810_vm3 = vweird.f32 %v956_v10  ;;  %vm809_vm4 = vweird.f32 %v1782_v48  ;;  %vm814_vm5 = vcmp.eq.f32.partialorder %v813_v53, 8.507059e+37 }
 0x288   :  { %v806_v17 = vsub.f32 1.0, %v805_v62  ;;  %v797_v60 = vsel %vm796_vm1, %v954_v43, %v793_v2  ;;  %832 = vst [vmem:[%s1921_s6 + $0x68] sm:$0xff] %v824_v1  ;;  %vm811_vm7 = vmor %vm809_vm4, %vm810_vm3 }
 0x289   :  { %v802_v41 = vsel %vm799_vm2, %v801_v51, %v797_v60  ;;  %v816_v46 = vor.u32 1.1754944e-38, %v815_v4 }
 0x28a   :  { %v807_v6 = vmul.f32 %v956_v10, %v806_v17  ;;  %v825_v7 = vmul.f32 %v802_v41, %v1734_v14 }
 0x28c   :  { %v808_v23 = vadd.f32 %v956_v10, %v807_v6  ;;  %833 = vst [vmem:[%s1921_s6 + $0x70] sm:$0xff] %v825_v7 }
 0x28e   :  { %v812_v8 = vsel %vm811_vm7, %v956_v10, %v808_v23 }
 0x28f   :  { %v817_v0 = vsel %vm814_vm5, %v816_v46, %v812_v8 }
 0x290   :  { %v826_v5 = vmul.f32 %v817_v0, %v1738_v20 }
 0x292   :  { %834 = vst [vmem:[%s1921_s6 + $0x78] sm:$0xff] %v826_v5 }

</bundles_post_ra>
